<compile_context>
chip_gen: v5e
topology: v5e:2x2
jax: 0.10.0
libtpu: 0.0.40
codegen_flags: <defaults>
</compile_context>

<pallas_src>
import functools

import jax
import jax.numpy as jnp
from jax.experimental import pallas as pl
from jax.experimental.pallas import tpu as pltpu


def _round_up(n, m):
    return ((n + m - 1) // m) * m


def _pad_to(a, shape):
    pads = [(0, s - d) for d, s in zip(a.shape, shape)]
    if all(p == (0, 0) for p in pads):
        return a
    return jnp.pad(a, pads)


def _residual_linear_kernel(x_ref, w1_ref, b1_ref, w2_ref, b2_ref, o_ref):
    x = x_ref[...]                                    # (TB, Dp) f32, kept for residual
    # First linear: h = x @ W1 + b1   (W1 stored (in, out), bf16 MXU operands)
    h = jnp.dot(x.astype(w1_ref.dtype), w1_ref[...],
                preferred_element_type=jnp.float32)
    h = h + b1_ref[...]                               # (1, Dp) broadcasts over TB, f32
    # LeakyReLU(0.2) on the VPU in f32
    h = jnp.where(h >= 0, h, 0.2 * h)
    # Second linear: y = h @ W2 + b2
    y = jnp.dot(h.astype(w2_ref.dtype), w2_ref[...],
                preferred_element_type=jnp.float32)
    y = y + b2_ref[...]
    # Residual add in f32
    o_ref[...] = (x + y).astype(o_ref.dtype)


@functools.partial(jax.jit, static_argnames=("block_b", "compute_dtype"))
def residual_linear(x, w1_t, b1, w2_t, b2, *, block_b=256,
                    compute_dtype=jnp.bfloat16):
    """x: (B, D); w1_t, w2_t: (D, D) stored (in, out); b1, b2: (1, D)."""
    B, D = x.shape

    # Lane-dense feature dim (multiple of 128); sublane-aligned batch tile.
    dp = _round_up(D, 128)
    tb = min(block_b, _round_up(B, 8))                # multiple of 8
    bp = _round_up(B, tb)                             # multiple of tb
    grid = (pl.cdiv(bp, tb),)

    # Zero-padding keeps the math exact: padded x cols / W rows-cols / bias
    # entries are zero, so padded output cols are zero and get sliced off.
    xp = _pad_to(x, (bp, dp))                                   # f32 (residual)
    w1p = _pad_to(w1_t, (dp, dp)).astype(compute_dtype)         # MXU operand
    w2p = _pad_to(w2_t, (dp, dp)).astype(compute_dtype)
    b1p = _pad_to(b1, (1, dp)).astype(jnp.float32)
    b2p = _pad_to(b2, (1, dp)).astype(jnp.float32)

    c_bytes = jnp.dtype(compute_dtype).itemsize
    w_bytes = 2 * dp * dp * c_bytes + 2 * dp * 4                # resident weights+biases
    act_bytes = 4 * tb * dp * 4                                 # 2 bufs each for x / out (f32)
    vmem_limit = max(16 << 20,
                     min(int(1.5 * (w_bytes + act_bytes)) + (4 << 20), 60 << 20))

    cost = pl.CostEstimate(
        flops=2 * 2 * bp * dp * dp,                             # two matmuls
        transcendentals=0,
        bytes_accessed=2 * bp * dp * 4 + w_bytes)

    out = pl.pallas_call(
        _residual_linear_kernel,
        out_shape=jax.ShapeDtypeStruct((bp, dp), x.dtype),
        grid_spec=pltpu.PrefetchScalarGridSpec(
            num_scalar_prefetch=0,
            grid=grid,
            in_specs=[
                pl.BlockSpec((tb, dp), lambda i: (i, 0)),       # x: tiled over B
                pl.BlockSpec((dp, dp), lambda i: (0, 0)),       # W1: VMEM-resident
                pl.BlockSpec((1, dp), lambda i: (0, 0)),        # b1
                pl.BlockSpec((dp, dp), lambda i: (0, 0)),       # W2
                pl.BlockSpec((1, dp), lambda i: (0, 0)),        # b2
            ],
            out_specs=pl.BlockSpec((tb, dp), lambda i: (i, 0)),
        ),
        compiler_params=pltpu.CompilerParams(
            dimension_semantics=("parallel",),                  # independent B tiles
            vmem_limit_bytes=vmem_limit),
        cost_estimate=cost,
    )(xp, w1p, b1p, w2p, b2p)

    return out[:B, :D]


def reference(x, w1_t, b1, w2_t, b2):
    h = x @ w1_t + b1
    h = jnp.where(h >= 0, h, 0.2 * h)
    return x + (h @ w2_t + b2)


def _make_inputs(key, B, D):
    kx, k1, k2, k3, k4 = jax.random.split(key, 5)
    bound = 1.0 / (D ** 0.5)
    x = jax.random.normal(kx, (B, D), dtype=jnp.float32)
    w1_t = jax.random.uniform(k1, (D, D), jnp.float32, -bound, bound)  # (in, out) = W1.T
    b1 = jax.random.uniform(k2, (1, D), jnp.float32, -bound, bound)
    w2_t = jax.random.uniform(k3, (D, D), jnp.float32, -bound, bound)
    b2 = jax.random.uniform(k4, (1, D), jnp.float32, -bound, bound)
    return x, w1_t, b1, w2_t, b2


if __name__ == "__main__":
    key = jax.random.PRNGKey(0)
    ka, kb = jax.random.split(key)

    # Case 1: shapes implied by the module at toy scale (batch=8, dim=32).
    args = _make_inputs(ka, 8, 32)
    ref = reference(*args)

    out_bf16 = residual_linear(*args)                 # bf16 MXU fast path
    jax.block_until_ready(out_bf16)
    assert out_bf16.shape == ref.shape
    err = float(jnp.max(jnp.abs(out_bf16 - ref)))
    assert jnp.allclose(out_bf16, ref, atol=7.5e-2, rtol=7.5e-2), err

    out_f32 = residual_linear(*args, compute_dtype=jnp.float32)  # exactness check
    jax.block_until_ready(out_f32)
    err = float(jnp.max(jnp.abs(out_f32 - ref)))
    assert jnp.allclose(out_f32, ref, atol=1e-4, rtol=1e-4), err

    # Case 2: multi-tile grid (4 steps) with padding in both B (200->256) and
    # D (96->128) to exercise the pipelined/padded path.
    args2 = _make_inputs(kb, 200, 96)
    ref2 = reference(*args2)
    out2 = residual_linear(*args2, block_b=64)
    jax.block_until_ready(out2)
    err = float(jnp.max(jnp.abs(out2 - ref2)))
    assert out2.shape == ref2.shape
    assert jnp.allclose(out2, ref2, atol=1e-1, rtol=1e-1), err

    print("KERNEL_OK")
</pallas_src>

<mosaic_0001>
module attributes {stable_mosaic.version = 11 : i64} {
  func.func @_residual_linear_kernel(%arg0: i32, %arg1: memref<8x128xf32, #tpu.memory_space<vmem>>, %arg2: memref<128x128xbf16, #tpu.memory_space<vmem>>, %arg3: memref<1x128xf32, #tpu.memory_space<vmem>>, %arg4: memref<128x128xbf16, #tpu.memory_space<vmem>>, %arg5: memref<1x128xf32, #tpu.memory_space<vmem>>, %arg6: memref<8x128xf32, #tpu.memory_space<vmem>>) attributes {dimension_semantics = [#tpu.dimension_semantics<parallel>], iteration_bounds = array<i64: 1>, scalar_prefetch = 0 : i64, scratch_operands = 0 : i64, tpu.core_type = #tpu.core_type<tc>, window_params = [{transform_indices = @transform_0, window_bounds = array<i64: 8, 128>}, {pipeline_mode = #tpu.pipeline_mode<synchronous>, transform_indices = @transform_1, window_bounds = array<i64: 128, 128>}, {pipeline_mode = #tpu.pipeline_mode<synchronous>, transform_indices = @transform_2, window_bounds = array<i64: 1, 128>}, {pipeline_mode = #tpu.pipeline_mode<synchronous>, transform_indices = @transform_3, window_bounds = array<i64: 128, 128>}, {pipeline_mode = #tpu.pipeline_mode<synchronous>, transform_indices = @transform_4, window_bounds = array<i64: 1, 128>}, {transform_indices = @transform_5, window_bounds = array<i64: 8, 128>}]} {
    %c0 = arith.constant 0 : index
    %c0_0 = arith.constant 0 : index
    %0 = vector.load %arg1[%c0, %c0_0] : memref<8x128xf32, #tpu.memory_space<vmem>>, vector<8x128xf32>
    %1 = arith.truncf %0 : vector<8x128xf32> to vector<8x128xbf16>
    %c0_1 = arith.constant 0 : index
    %c0_2 = arith.constant 0 : index
    %2 = vector.load %arg2[%c0_1, %c0_2] : memref<128x128xbf16, #tpu.memory_space<vmem>>, vector<128x128xbf16>
    %cst = arith.constant dense<0.000000e+00> : vector<8x128xf32>
    %3 = tpu.matmul %1, %2, %cst {dimension_numbers = #tpu.dot_dimension_numbers<[1], [0], [0], [1], [0, 0, 1, 1], [], []>} : vector<8x128xbf16>, vector<128x128xbf16>, vector<8x128xf32> -> vector<8x128xf32>
    %c0_3 = arith.constant 0 : index
    %c0_4 = arith.constant 0 : index
    %4 = vector.load %arg3[%c0_3, %c0_4] : memref<1x128xf32, #tpu.memory_space<vmem>>, vector<1x128xf32>
    %5 = vector.broadcast %4 : vector<1x128xf32> to vector<8x128xf32>
    %6 = arith.addf %3, %5 : vector<8x128xf32>
    %cst_5 = arith.constant 0.000000e+00 : f32
    %7 = vector.broadcast %cst_5 : f32 to vector<8x128xf32>
    %8 = arith.cmpf oge, %6, %7 : vector<8x128xf32>
    %cst_6 = arith.constant 2.000000e-01 : f32
    %9 = vector.broadcast %cst_6 : f32 to vector<8x128xf32>
    %10 = arith.mulf %9, %6 : vector<8x128xf32>
    %11 = arith.select %8, %6, %10 : vector<8x128xi1>, vector<8x128xf32>
    %12 = arith.truncf %11 : vector<8x128xf32> to vector<8x128xbf16>
    %c0_7 = arith.constant 0 : index
    %c0_8 = arith.constant 0 : index
    %13 = vector.load %arg4[%c0_7, %c0_8] : memref<128x128xbf16, #tpu.memory_space<vmem>>, vector<128x128xbf16>
    %cst_9 = arith.constant dense<0.000000e+00> : vector<8x128xf32>
    %14 = tpu.matmul %12, %13, %cst_9 {dimension_numbers = #tpu.dot_dimension_numbers<[1], [0], [0], [1], [0, 0, 1, 1], [], []>} : vector<8x128xbf16>, vector<128x128xbf16>, vector<8x128xf32> -> vector<8x128xf32>
    %c0_10 = arith.constant 0 : index
    %c0_11 = arith.constant 0 : index
    %15 = vector.load %arg5[%c0_10, %c0_11] : memref<1x128xf32, #tpu.memory_space<vmem>>, vector<1x128xf32>
    %16 = vector.broadcast %15 : vector<1x128xf32> to vector<8x128xf32>
    %17 = arith.addf %14, %16 : vector<8x128xf32>
    %18 = arith.addf %0, %17 : vector<8x128xf32>
    %c0_12 = arith.constant 0 : index
    %c0_13 = arith.constant 0 : index
    %19 = vector.load %arg6[%c0_12, %c0_13] : memref<8x128xf32, #tpu.memory_space<vmem>>, vector<8x128xf32>
    tpu.vector_store %arg6[%c0_12, %c0_13], %18 {strides = array<i32>} : memref<8x128xf32, #tpu.memory_space<vmem>>, vector<8x128xf32>,
    return
  }
  func.func @transform_0(%arg0: i32) -> (i32, i32) {
    %c0_i32 = arith.constant 0 : i32
    %c0_i32_0 = arith.constant 0 : i32
    return %arg0, %c0_i32 : i32, i32
  }
  func.func @transform_1(%arg0: i32) -> (i32, i32) {
    %c0_i32 = arith.constant 0 : i32
    %c0_i32_0 = arith.constant 0 : i32
    %c0_i32_1 = arith.constant 0 : i32
    return %c0_i32, %c0_i32_0 : i32, i32
  }
  func.func @transform_2(%arg0: i32) -> (i32, i32) {
    %c0_i32 = arith.constant 0 : i32
    %c0_i32_0 = arith.constant 0 : i32
    %c0_i32_1 = arith.constant 0 : i32
    return %c0_i32, %c0_i32_0 : i32, i32
  }
  func.func @transform_3(%arg0: i32) -> (i32, i32) {
    %c0_i32 = arith.constant 0 : i32
    %c0_i32_0 = arith.constant 0 : i32
    %c0_i32_1 = arith.constant 0 : i32
    return %c0_i32, %c0_i32_0 : i32, i32
  }
  func.func @transform_4(%arg0: i32) -> (i32, i32) {
    %c0_i32 = arith.constant 0 : i32
    %c0_i32_0 = arith.constant 0 : i32
    %c0_i32_1 = arith.constant 0 : i32
    return %c0_i32, %c0_i32_0 : i32, i32
  }
  func.func @transform_5(%arg0: i32) -> (i32, i32) {
    %c0_i32 = arith.constant 0 : i32
    %c0_i32_0 = arith.constant 0 : i32
    return %arg0, %c0_i32 : i32, i32
  }
}

</mosaic_0001>

<bundles_post_ra>
// kernel: residual_linear.1
= control target key start
LH: loop header
LB: loop body
LE: loop exit
PB: predicated region body
PF: predicated region fallthrough
CT: control target
= control target key end

     0   :  { %s407_s0 = inlined_call_operand.vmem [shape: f32[8,128], index: 0, kind: input, shape index: {}]   ;;  %s408_s1 = inlined_call_operand.vmem [shape: bf16[128,128], index: 1, kind: input, shape index: {}]   ;;  %s409_s2 = inlined_call_operand.vmem [shape: f32[1,128], index: 2, kind: input, shape index: {}]   ;;  %s410_s3 = inlined_call_operand.vmem [shape: bf16[128,128], index: 3, kind: input, shape index: {}]   ;;  %s411_s4 = inlined_call_operand.vmem [shape: f32[1,128], index: 4, kind: input, shape index: {}]   ;;  %s412_s5 = inlined_call_operand.hbm [shape: f32[8,128], index: 5, kind: output, shape index: {}]  }
   0x1   :  { %v278_v0 = vld [vmem:[%s408_s1 + $0x38] sm:$0xff]  ;;  %v277_v1 = vld [vmem:[%s408_s1 + $0x30] sm:$0xff]  ;;  %v276_v4 = vld [vmem:[%s408_s1 + $0x28] sm:$0xff] }
   0x2   :  { %91 = vmatpush.bf16.msra.mxu0 %v278_v0  ;;  %v286_v2 = vld [vmem:[%s410_s3 + $0x38] sm:$0xff]  ;;  %v285_v3 = vld [vmem:[%s410_s3 + $0x30] sm:$0xff] }
   0x3   :  { %176 = vmatpush.bf16.msra.mxu1 %v286_v2 }
   0x6   :  { %92 = vmatpush.bf16.msra.mxu0 %v277_v1 }
   0x7   :  { %10 = vsyncpa [#allocation3], 0  ;;  %177 = vmatpush.bf16.msra.mxu1 %v285_v3  ;;  %v284_v5 = vld [vmem:[%s410_s3 + $0x28] sm:$0xff]  ;;  %v275_v6 = vld [vmem:[%s408_s1 + $0x20] sm:$0xff]  ;;  %s316_s29 = smov [#allocation2]   ;;  %s198_s7 = sshll.u32 %s412_s5, 4  ;;  %s199_s7 = int_to_ptr.hbm [resolvable:$true] %s198_s7 }
   0x8   :  { %v283_v7 = vld [vmem:[%s410_s3 + $0x20] sm:$0xff]  ;;  %v274_v8 = vld [vmem:[%s408_s1 + $0x18] sm:$0xff]  ;;  %v273_v10 = vld [vmem:[%s408_s1 + $0x10] sm:$0xff] }
   0x9   :  { %v282_v9 = vld [vmem:[%s410_s3 + $0x18] sm:$0xff]  ;;  %v281_v11 = vld [vmem:[%s410_s3 + $0x10] sm:$0xff]  ;;  %v272_v12 = vld [vmem:[%s408_s1 + $0x8] sm:$0xff] }
   0xa   :  { %93 = vmatpush.bf16.msra.mxu0 %v276_v4  ;;  %v271_v13 = vld [vmem:[%s408_s1] sm:$0xff]  ;;  %v280_v16 = vld [vmem:[%s410_s3 + $0x8] sm:$0xff] }
   0xb   :  { %178 = vmatpush.bf16.msra.mxu1 %v284_v5  ;;  %v21_v14 = vld [vmem:[%s407_s0] sm:$0xff] }
   0xc   :  { %v22_v15 = vpack.c.bf16 %v21_v14, %v21_v14  ;;  %v279_v17 = vld [vmem:[%s410_s3] sm:$0xff]  ;;  %s196_s3 = sshll.u32 %s316_s29, 4  ;;  %s197_s3 = int_to_ptr.vmem [resolvable:$true] %s196_s3 }
   0xd   :  { %v288_v18 = vld [vmem:[%s409_s2] ss:$0 sm:$0xff] }
   0xe   :  { %94 = vmatpush.bf16.msra.mxu0 %v275_v6  ;;  %v289_v25 = vld [vmem:[%s411_s4] ss:$0 sm:$0xff] }
   0xf   :  { %179 = vmatpush.bf16.msra.mxu1 %v283_v7 }
  0x12   :  { %95 = vmatpush.bf16.msra.mxu0 %v274_v8 }
  0x13   :  { %180 = vmatpush.bf16.msra.mxu1 %v282_v9 }
  0x16   :  { %96 = vmatpush.bf16.msra.mxu0 %v273_v10 }
  0x17   :  { %181 = vmatpush.bf16.msra.mxu1 %v281_v11 }
  0x1a   :  { %97 = vmatpush.bf16.msra.mxu0 %v272_v12 }
  0x1b   :  { %182 = vmatpush.bf16.msra.mxu1 %v280_v16 }
  0x1e   :  { %98 = vmatpush.bf16.msra.mxu0 %v271_v13 }
  0x1f   :  { %183 = vmatpush.bf16.msra.mxu1 %v279_v17 }
  0x21   :  { %99 = vmatmul.bf16.vlgmr.msra.gmra.mxu0 %v22_v15 }
  0x9e   :  { %v100_v19 = vpop.f32.mrf.mxu0 }
  0x9f   :  { %v101_v20 = vadd.f32 %v288_v18, %v100_v19 }
  0xa1   :  { %v105_v21 = vmul.f32 0.2, %v101_v20  ;;  %vm104_vm0 = vcmp.ge.f32.partialorder %v101_v20, 0.0 }
  0xa3   :  { %v106_v22 = vsel %vm104_vm0, %v101_v20, %v105_v21 }
  0xa4   :  { %v107_v23 = vpack.c.bf16 %v106_v22, %v106_v22 }
  0xa6   :  { %v102_v24 = vpop.f32.mrf.mxu0  ;;  %184 = vmatmul.bf16.vlgmr.msra.gmra.mxu1 %v107_v23 }
 0x123   :  { %v185_v26 = vpop.f32.mrf.mxu1 }
 0x124   :  { %v186_v27 = vadd.f32 %v289_v25, %v185_v26 }
 0x126   :  { %v189_v28 = vadd.f32 %v186_v27, %v21_v14 }
 0x128   :  { %190 = vst [vmem:[#allocation2] sm:$0xff] %v189_v28 }
 0x129   :  { %201 = dma.vmem_to_hbm [thread:$0]  %s197_s3, 128, %s199_s7, [#allocation3]  }
 0x12b   :  { %v187_v29 = vpop.f32.mrf.mxu1 }
 0x12c   :  { %314 = dma.done.wait [#allocation3], 128  }
 0x12d   :  { %315 = vsyncadd [#allocation3], 4294967168 }
 0x12e   :  { %206 = vsyncpa [#allocation3], 1 }

</bundles_post_ra>
